<compile_context>
chip_gen: v6e
topology: v6e:2x2x1
jax: 0.10.0
libtpu: 0.0.40
codegen_flags: <defaults>
</compile_context>

<pallas_src>
import numpy as np
import jax
import jax.numpy as jnp
from jax.experimental import pallas as pl
from jax.experimental.pallas import tpu as pltpu

_SQRT2_INV = 0.7071067811865476
OP_DTYPE = jnp.bfloat16      # operator / MXU dtype; jnp.float32 for exact numerics


# --------------------------------------------------------------------------------------
# Pallas kernel: one (H, C*W) slab per batch element.
# --------------------------------------------------------------------------------------
def _dwt_fus_kernel(x_ref,      # (1, H, CW)  f32   input slab for this batch element
                    small_ref,  # (5H, H)     op    rows [0:2H)=[R_hi;R_lo], then V0,V1,V2
                    kab_ref,    # (2CW, CW)   op    [Ka; Kb]  (col-Haar ∘ up ∘ conv1 mix)
                    hm_ref,     # (CW, 3CW)   op    [HM_0 | HM_1 | HM_2] depthwise col ops
                    mix2_ref,   # (CW, CW)    op    final 1x1 conv channel mix
                    bias_ref,   # (3, CW)     f32   rows: conv1 bias, dw bias, pw bias
                    out_ref):   # (1, H, CW)  f32
    f32 = jnp.float32
    cdt = kab_ref.dtype                       # operator / MXU input dtype
    H, CW = x_ref.shape[1], x_ref.shape[2]

    def mm(a, b):
        return jnp.dot(a.astype(cdt), b.astype(cdt), preferred_element_type=f32)

    X = x_ref[0]                              # (H, CW) f32

    # ---- Haar high bands (LH+HL+HH) + 1x1 conv mix + bilinear x2 upsample.
    # One row-side matmul for both hi/lo branches, then one K=2*CW column matmul.
    RX = mm(small_ref[0:2 * H, :], X)                              # (2H, CW) f32
    RXcat = jnp.concatenate([RX[:H, :], RX[H:, :]], axis=-1)       # (H, 2CW)
    up = mm(RXcat, kab_ref[...]) + bias_ref[0:1, :]                # (H, CW) f32

    # ---- Gates: x1 = sigmoid(up)*x ; x2 = sigmoid(x - l_component)*x == 0.5*x.
    g = (jax.nn.sigmoid(up) + 0.5) * X                             # (H, CW) f32

    # ---- Depthwise 3x3 conv (zero pad): acc = sum_p V_p @ (g @ HM_p) + bias,
    #      with the three right matmuls merged into one N = 3*CW push.
    GH = mm(g, hm_ref[...])                                        # (H, 3CW) f32
    acc = (mm(small_ref[2 * H:3 * H, :], GH[:, 0:CW])
           + mm(small_ref[3 * H:4 * H, :], GH[:, CW:2 * CW])
           + mm(small_ref[4 * H:5 * H, :], GH[:, 2 * CW:3 * CW])
           + bias_ref[1:2, :])                                     # (H, CW) f32

    # ---- Exact GELU (erf form = torch.nn.GELU default).
    gel = 0.5 * acc * (1.0 + jax.lax.erf(acc * _SQRT2_INV))

    # ---- Final 1x1 conv as a channel-mix matmul.
    out_ref[0] = (mm(gel, mix2_ref[...]) + bias_ref[2:3, :]).astype(out_ref.dtype)


# --------------------------------------------------------------------------------------
# Host-side (once-per-weight-update) operator construction.
# --------------------------------------------------------------------------------------
def _haar_analysis_matrices(n):
    # pywt 'haar': dec_lo=[s,s], dec_hi=[-s,s]; get_filter_tensors(flip=True) reverses
    # them -> lo=[s,s], hi=[s,-s]. Row i applies the 2-tap filter at (2i, 2i+1).
    s = _SQRT2_INV
    lo = np.array([s, s], dtype=np.float64)
    hi = np.array([s, -s], dtype=np.float64)
    m_lo = np.zeros((n // 2, n), dtype=np.float64)
    m_hi = np.zeros((n // 2, n), dtype=np.float64)
    for i in range(n // 2):
        m_lo[i, 2 * i:2 * i + 2] = lo
        m_hi[i, 2 * i:2 * i + 2] = hi
    return m_lo, m_hi


def _bilinear_up2_matrix(n_in):
    # 1-D factor of nn.Upsample(scale_factor=2, mode='bilinear', align_corners=True).
    n_out = 2 * n_in
    m = np.zeros((n_out, n_in), dtype=np.float64)
    if n_in == 1:
        m[:, 0] = 1.0
        return m
    scale = (n_in - 1) / (n_out - 1)
    for i in range(n_out):
        src = i * scale
        i0 = min(int(np.floor(src)), n_in - 1)
        i1 = min(i0 + 1, n_in - 1)
        frac = src - i0
        m[i, i0] += 1.0 - frac
        m[i, i1] += frac
    return m


def build_dwt_operators(params, C, H, W, op_dtype=OP_DTYPE):
    """Fold Haar DWT + bilinear upsample + conv weights into a few dense operators.

    Pure host-side numpy (float64); call once per weight update. Returns device arrays
    sized independently of the batch dimension.
    """
    assert H % 2 == 0 and W % 2 == 0, "haar DWT path requires even spatial dims"
    CW = C * W

    rlo, rhi = _haar_analysis_matrices(H)            # (H/2, H)
    clo, chi = _haar_analysis_matrices(W)            # (W/2, W)
    ur = _bilinear_up2_matrix(H // 2)                # (H, H/2)
    uc = _bilinear_up2_matrix(W // 2)                # (W, W/2)

    R_hi = ur @ rhi                                  # (H, H)  up ∘ row-highpass
    R_lo = ur @ rlo                                  # (H, H)  up ∘ row-lowpass
    C_a = (clo.T + chi.T) @ uc.T                     # (W, W)  (LH+HH col ops) ∘ up
    C_b = chi.T @ uc.T                               # (W, W)  (HL col op) ∘ up

    w1 = np.asarray(params["conv1_w"], dtype=np.float64)          # (C, C)
    Ka = np.kron(w1.T, C_a)                                       # (CW, CW)
    Kb = np.kron(w1.T, C_b)                                       # (CW, CW)
    Kab = np.vstack([Ka, Kb])                                     # (2CW, CW)

    # Depthwise 3x3 (zero pad): vertical shifts V_p (left), per-channel weighted
    # horizontal shifts HM_p (right, block-diagonal over channels).
    V = [np.eye(H, k=p - 1) for p in range(3)]                    # (H, H) each
    S = [np.eye(W, k=1 - q) for q in range(3)]                    # (W, W) each
    dw_w = np.asarray(params["dw_w"], dtype=np.float64)           # (C, 3, 3)
    HM = np.zeros((3, CW, CW), dtype=np.float64)
    for p in range(3):
        for c in range(C):
            m_cp = sum(dw_w[c, p, q] * S[q] for q in range(3))    # (W, W)
            HM[p, c * W:(c + 1) * W, c * W:(c + 1) * W] = m_cp
    HMcat = np.hstack([HM[0], HM[1], HM[2]])                      # (CW, 3CW)

    pw_w = np.asarray(params["pw_w"], dtype=np.float64)           # (C, C)
    MIX2 = np.kron(pw_w.T, np.eye(W))                             # (CW, CW)

    small_ops = np.vstack([R_hi, R_lo] + V)                       # (5H, H)

    def brow(b):
        return np.repeat(np.asarray(b, dtype=np.float64), W)      # (CW,)

    biases = np.stack([brow(params["conv1_b"]),
                       brow(params["dw_b"]),
                       brow(params["pw_b"])], axis=0)             # (3, CW)

    return (jnp.asarray(small_ops, dtype=op_dtype),
            jnp.asarray(Kab, dtype=op_dtype),
            jnp.asarray(HMcat, dtype=op_dtype),
            jnp.asarray(MIX2, dtype=op_dtype),
            jnp.asarray(biases, dtype=jnp.float32))


# --------------------------------------------------------------------------------------
# Jitted forward: pack -> pallas_call(grid over batch) -> unpack.
# --------------------------------------------------------------------------------------
@jax.jit
def dwt_forward(x, small_ops, kab, hmcat, mix2, biases):
    B, C, H, W = x.shape
    CW = C * W
    f32 = jnp.float32

    # (B, C, H, W) -> (B, H, C*W): lane index = c*W + w (pure layout plumbing).
    xp = x.astype(f32).transpose(0, 2, 1, 3).reshape(B, H, CW)

    out_slab = pl.pallas_call(
        _dwt_fus_kernel,
        out_shape=jax.ShapeDtypeStruct((B, H, CW), f32),
        grid=(B,),
        in_specs=[
            pl.BlockSpec((1, H, CW), lambda b: (b, 0, 0)),
            pl.BlockSpec(small_ops.shape, lambda b: (0, 0)),   # shared across grid steps
            pl.BlockSpec(kab.shape, lambda b: (0, 0)),
            pl.BlockSpec(hmcat.shape, lambda b: (0, 0)),
            pl.BlockSpec(mix2.shape, lambda b: (0, 0)),
            pl.BlockSpec(biases.shape, lambda b: (0, 0)),
        ],
        out_specs=pl.BlockSpec((1, H, CW), lambda b: (b, 0, 0)),
        compiler_params=pltpu.CompilerParams(dimension_semantics=("parallel",)),
    )(xp, small_ops, kab, hmcat, mix2, biases)

    return out_slab.reshape(B, H, C, W).transpose(0, 2, 1, 3)


# --------------------------------------------------------------------------------------
# Straight-line pure-JAX reference of the PyTorch module (for numeric validation).
# --------------------------------------------------------------------------------------
def _reference_forward(x, params):
    B, C, H, W = x.shape
    f = jnp.float32
    x = x.astype(f)
    rlo, rhi = _haar_analysis_matrices(H)
    clo, chi = _haar_analysis_matrices(W)
    ur = _bilinear_up2_matrix(H // 2)
    uc = _bilinear_up2_matrix(W // 2)
    rlo, rhi, clo, chi, ur, uc = (jnp.asarray(a, f) for a in (rlo, rhi, clo, chi, ur, uc))

    lh = jnp.einsum("ah,bchw,gw->bcag", rhi, x, clo)
    hl = jnp.einsum("ah,bchw,gw->bcag", rlo, x, chi)
    hh = jnp.einsum("ah,bchw,gw->bcag", rhi, x, chi)
    hcomp = lh + hl + hh
    w1 = params["conv1_w"].astype(f)
    hcomp = jnp.einsum("dc,bchw->bdhw", w1, hcomp) + params["conv1_b"].astype(f)[None, :, None, None]
    up = jnp.einsum("ia,bcag,jg->bcij", ur, hcomp, uc)

    x1 = jax.nn.sigmoid(up) * x
    x2 = jax.nn.sigmoid(x - x) * x        # l_component == x for 'haar' + even H/W
    y = x1 + x2

    dw_w = params["dw_w"].astype(f)
    yp = jnp.pad(y, ((0, 0), (0, 0), (1, 1), (1, 1)))
    acc = jnp.zeros_like(y)
    for p in range(3):
        for q in range(3):
            acc = acc + dw_w[None, :, p, q, None, None] * yp[:, :, p:p + H, q:q + W]
    acc = acc + params["dw_b"].astype(f)[None, :, None, None]
    gel = 0.5 * acc * (1.0 + jax.lax.erf(acc * _SQRT2_INV))
    out = jnp.einsum("dc,bchw->bdhw", params["pw_w"].astype(f), gel)
    return out + params["pw_b"].astype(f)[None, :, None, None]


if __name__ == "__main__":
    B, C, H, W = 2, 4, 16, 16
    key = jax.random.PRNGKey(0)
    kx, k1, k2, k3, k4, k5, k6 = jax.random.split(key, 7)
    x = jax.random.normal(kx, (B, C, H, W), dtype=jnp.float32)

    params = {
        # self.conv = nn.Conv2d(C, C, 1): weight (C, C, 1, 1) -> (C, C), bias (C,)
        "conv1_w": 0.2 * jax.random.normal(k1, (C, C), dtype=jnp.float32),
        "conv1_b": 0.1 * jax.random.normal(k2, (C,), dtype=jnp.float32),
        # fus[0] = nn.Conv2d(C, C, 3, padding=1, groups=C): weight (C, 1, 3, 3)
        "dw_w": 0.2 * jax.random.normal(k3, (C, 3, 3), dtype=jnp.float32),
        "dw_b": 0.1 * jax.random.normal(k4, (C,), dtype=jnp.float32),
        # fus[2] = nn.Conv2d(C, C, 1)
        "pw_w": 0.2 * jax.random.normal(k5, (C, C), dtype=jnp.float32),
        "pw_b": 0.1 * jax.random.normal(k6, (C,), dtype=jnp.float32),
    }

    # Hoisted, once-per-weight-update operator build (perf feedback item 1 & 2).
    ops = build_dwt_operators(params, C, H, W, op_dtype=OP_DTYPE)

    out = dwt_forward(x, *ops)
    out = jax.block_until_ready(out)
    assert out.shape == (B, C, H, W)
    assert bool(jnp.all(jnp.isfinite(out)))

    # Numeric validation against the un-folded reference (tolerance covers bf16 operators).
    ref = _reference_forward(x, params)
    max_err = float(jnp.max(jnp.abs(out - ref)))
    tol = 1e-1 if OP_DTYPE == jnp.bfloat16 else 1e-4
    assert max_err < tol, f"max abs error vs reference: {max_err}"

    print("KERNEL_OK")
</pallas_src>

<mosaic_0001>
module attributes {stable_mosaic.version = 11 : i64} {
  func.func @_dwt_fus_kernel(%arg0: i32, %arg1: memref<1x16x64xf32, #tpu.memory_space<vmem>>, %arg2: memref<80x16xbf16, #tpu.memory_space<vmem>>, %arg3: memref<128x64xbf16, #tpu.memory_space<vmem>>, %arg4: memref<64x192xbf16, #tpu.memory_space<vmem>>, %arg5: memref<64x64xbf16, #tpu.memory_space<vmem>>, %arg6: memref<3x64xf32, #tpu.memory_space<vmem>>, %arg7: memref<1x16x64xf32, #tpu.memory_space<vmem>>) attributes {dimension_semantics = [#tpu.dimension_semantics<parallel>], iteration_bounds = array<i64: 2>, scalar_prefetch = 0 : i64, scratch_operands = 0 : i64, tpu.core_type = #tpu.core_type<tc>, window_params = [{transform_indices = @transform_0, window_bounds = array<i64: 1, 16, 64>}, {pipeline_mode = #tpu.pipeline_mode<synchronous>, transform_indices = @transform_1, window_bounds = array<i64: 80, 16>}, {pipeline_mode = #tpu.pipeline_mode<synchronous>, transform_indices = @transform_2, window_bounds = array<i64: 128, 64>}, {pipeline_mode = #tpu.pipeline_mode<synchronous>, transform_indices = @transform_3, window_bounds = array<i64: 64, 192>}, {pipeline_mode = #tpu.pipeline_mode<synchronous>, transform_indices = @transform_4, window_bounds = array<i64: 64, 64>}, {pipeline_mode = #tpu.pipeline_mode<synchronous>, transform_indices = @transform_5, window_bounds = array<i64: 3, 64>}, {transform_indices = @transform_6, window_bounds = array<i64: 1, 16, 64>}]} {
    %c0 = arith.constant 0 : index
    %c0_0 = arith.constant 0 : index
    %c0_1 = arith.constant 0 : index
    %0 = vector.load %arg1[%c0, %c0_0, %c0_1] : memref<1x16x64xf32, #tpu.memory_space<vmem>>, vector<1x16x64xf32>
    %1 = vector.shape_cast %0 : vector<1x16x64xf32> to vector<16x64xf32>
    %c0_2 = arith.constant 0 : index
    %c0_3 = arith.constant 0 : index
    %2 = vector.load %arg2[%c0_2, %c0_3] : memref<80x16xbf16, #tpu.memory_space<vmem>>, vector<32x16xbf16>
    %3 = arith.truncf %1 : vector<16x64xf32> to vector<16x64xbf16>
    %cst = arith.constant dense<0.000000e+00> : vector<32x64xf32>
    %4 = tpu.matmul %2, %3, %cst {dimension_numbers = #tpu.dot_dimension_numbers<[1], [0], [0], [1], [0, 0, 1, 1], [], []>} : vector<32x16xbf16>, vector<16x64xbf16>, vector<32x64xf32> -> vector<32x64xf32>
    %5 = vector.extract_strided_slice %4 {offsets = [0, 0], sizes = [16, 64], strides = [1, 1]} : vector<32x64xf32> to vector<16x64xf32>
    %6 = vector.extract_strided_slice %4 {offsets = [16, 0], sizes = [16, 64], strides = [1, 1]} : vector<32x64xf32> to vector<16x64xf32>
    %7 = tpu.concatenate %5, %6 in 1 : vector<16x64xf32>, vector<16x64xf32> -> vector<16x128xf32>
    %c0_4 = arith.constant 0 : index
    %c0_5 = arith.constant 0 : index
    %8 = vector.load %arg3[%c0_4, %c0_5] : memref<128x64xbf16, #tpu.memory_space<vmem>>, vector<128x64xbf16>
    %9 = arith.truncf %7 : vector<16x128xf32> to vector<16x128xbf16>
    %cst_6 = arith.constant dense<0.000000e+00> : vector<16x64xf32>
    %10 = tpu.matmul %9, %8, %cst_6 {dimension_numbers = #tpu.dot_dimension_numbers<[1], [0], [0], [1], [0, 0, 1, 1], [], []>} : vector<16x128xbf16>, vector<128x64xbf16>, vector<16x64xf32> -> vector<16x64xf32>
    %c0_7 = arith.constant 0 : index
    %c0_8 = arith.constant 0 : index
    %11 = vector.load %arg6[%c0_7, %c0_8] : memref<3x64xf32, #tpu.memory_space<vmem>>, vector<1x64xf32>
    %12 = vector.broadcast %11 : vector<1x64xf32> to vector<16x64xf32>
    %13 = arith.addf %10, %12 : vector<16x64xf32>
    %14 = arith.negf %13 : vector<16x64xf32>
    %15 = math.exp %14 : vector<16x64xf32>
    %cst_9 = arith.constant 1.000000e+00 : f32
    %16 = vector.broadcast %cst_9 : f32 to vector<16x64xf32>
    %17 = arith.addf %16, %15 : vector<16x64xf32>
    %18 = arith.divf %16, %17 : vector<16x64xf32>
    %cst_10 = arith.constant 5.000000e-01 : f32
    %19 = vector.broadcast %cst_10 : f32 to vector<16x64xf32>
    %20 = arith.addf %18, %19 : vector<16x64xf32>
    %21 = arith.mulf %20, %1 : vector<16x64xf32>
    %c0_11 = arith.constant 0 : index
    %c0_12 = arith.constant 0 : index
    %22 = vector.load %arg4[%c0_11, %c0_12] : memref<64x192xbf16, #tpu.memory_space<vmem>>, vector<64x192xbf16>
    %23 = arith.truncf %21 : vector<16x64xf32> to vector<16x64xbf16>
    %cst_13 = arith.constant dense<0.000000e+00> : vector<16x192xf32>
    %24 = tpu.matmul %23, %22, %cst_13 {dimension_numbers = #tpu.dot_dimension_numbers<[1], [0], [0], [1], [0, 0, 1, 1], [], []>} : vector<16x64xbf16>, vector<64x192xbf16>, vector<16x192xf32> -> vector<16x192xf32>
    %c32 = arith.constant 32 : index
    %c0_14 = arith.constant 0 : index
    %25 = vector.load %arg2[%c32, %c0_14] : memref<80x16xbf16, #tpu.memory_space<vmem>>, vector<16x16xbf16>
    %26 = vector.extract_strided_slice %24 {offsets = [0, 0], sizes = [16, 64], strides = [1, 1]} : vector<16x192xf32> to vector<16x64xf32>
    %27 = arith.truncf %26 : vector<16x64xf32> to vector<16x64xbf16>
    %cst_15 = arith.constant dense<0.000000e+00> : vector<16x64xf32>
    %28 = tpu.matmul %25, %27, %cst_15 {dimension_numbers = #tpu.dot_dimension_numbers<[1], [0], [0], [1], [0, 0, 1, 1], [], []>} : vector<16x16xbf16>, vector<16x64xbf16>, vector<16x64xf32> -> vector<16x64xf32>
    %c48 = arith.constant 48 : index
    %c0_16 = arith.constant 0 : index
    %29 = vector.load %arg2[%c48, %c0_16] : memref<80x16xbf16, #tpu.memory_space<vmem>>, vector<16x16xbf16>
    %30 = vector.extract_strided_slice %24 {offsets = [0, 64], sizes = [16, 64], strides = [1, 1]} : vector<16x192xf32> to vector<16x64xf32>
    %31 = arith.truncf %30 : vector<16x64xf32> to vector<16x64xbf16>
    %cst_17 = arith.constant dense<0.000000e+00> : vector<16x64xf32>
    %32 = tpu.matmul %29, %31, %cst_17 {dimension_numbers = #tpu.dot_dimension_numbers<[1], [0], [0], [1], [0, 0, 1, 1], [], []>} : vector<16x16xbf16>, vector<16x64xbf16>, vector<16x64xf32> -> vector<16x64xf32>
    %33 = arith.addf %28, %32 : vector<16x64xf32>
    %c64 = arith.constant 64 : index
    %c0_18 = arith.constant 0 : index
    %34 = vector.load %arg2[%c64, %c0_18] : memref<80x16xbf16, #tpu.memory_space<vmem>>, vector<16x16xbf16>
    %35 = vector.extract_strided_slice %24 {offsets = [0, 128], sizes = [16, 64], strides = [1, 1]} : vector<16x192xf32> to vector<16x64xf32>
    %36 = arith.truncf %35 : vector<16x64xf32> to vector<16x64xbf16>
    %cst_19 = arith.constant dense<0.000000e+00> : vector<16x64xf32>
    %37 = tpu.matmul %34, %36, %cst_19 {dimension_numbers = #tpu.dot_dimension_numbers<[1], [0], [0], [1], [0, 0, 1, 1], [], []>} : vector<16x16xbf16>, vector<16x64xbf16>, vector<16x64xf32> -> vector<16x64xf32>
    %38 = arith.addf %33, %37 : vector<16x64xf32>
    %c1 = arith.constant 1 : index
    %c0_20 = arith.constant 0 : index
    %39 = vector.load %arg6[%c1, %c0_20] : memref<3x64xf32, #tpu.memory_space<vmem>>, vector<1x64xf32>
    %40 = vector.broadcast %39 : vector<1x64xf32> to vector<16x64xf32>
    %41 = arith.addf %38, %40 : vector<16x64xf32>
    %cst_21 = arith.constant 5.000000e-01 : f32
    %42 = vector.broadcast %cst_21 : f32 to vector<16x64xf32>
    %43 = arith.mulf %42, %41 : vector<16x64xf32>
    %cst_22 = arith.constant 0.707106769 : f32
    %44 = vector.broadcast %cst_22 : f32 to vector<16x64xf32>
    %45 = arith.mulf %41, %44 : vector<16x64xf32>
    %46 = math.erf %45 : vector<16x64xf32>
    %cst_23 = arith.constant 1.000000e+00 : f32
    %47 = vector.broadcast %cst_23 : f32 to vector<16x64xf32>
    %48 = arith.addf %47, %46 : vector<16x64xf32>
    %49 = arith.mulf %43, %48 : vector<16x64xf32>
    %c0_24 = arith.constant 0 : index
    %c0_25 = arith.constant 0 : index
    %50 = vector.load %arg5[%c0_24, %c0_25] : memref<64x64xbf16, #tpu.memory_space<vmem>>, vector<64x64xbf16>
    %51 = arith.truncf %49 : vector<16x64xf32> to vector<16x64xbf16>
    %cst_26 = arith.constant dense<0.000000e+00> : vector<16x64xf32>
    %52 = tpu.matmul %51, %50, %cst_26 {dimension_numbers = #tpu.dot_dimension_numbers<[1], [0], [0], [1], [0, 0, 1, 1], [], []>} : vector<16x64xbf16>, vector<64x64xbf16>, vector<16x64xf32> -> vector<16x64xf32>
    %c2 = arith.constant 2 : index
    %c0_27 = arith.constant 0 : index
    %53 = vector.load %arg6[%c2, %c0_27] : memref<3x64xf32, #tpu.memory_space<vmem>>, vector<1x64xf32>
    %54 = vector.broadcast %53 : vector<1x64xf32> to vector<16x64xf32>
    %55 = arith.addf %52, %54 : vector<16x64xf32>
    %c0_28 = arith.constant 0 : index
    %c0_29 = arith.constant 0 : index
    %c0_30 = arith.constant 0 : index
    %56 = vector.load %arg7[%c0_28, %c0_29, %c0_30] : memref<1x16x64xf32, #tpu.memory_space<vmem>>, vector<1x16x64xf32>
    %57 = vector.shape_cast %56 : vector<1x16x64xf32> to vector<16x64xf32>
    %58 = vector.shape_cast %55 : vector<16x64xf32> to vector<1x16x64xf32>
    tpu.vector_store %arg7[%c0_28, %c0_29, %c0_30], %58 {strides = array<i32>} : memref<1x16x64xf32, #tpu.memory_space<vmem>>, vector<1x16x64xf32>,
    return
  }
  func.func @transform_0(%arg0: i32) -> (i32, i32, i32) {
    %c0_i32 = arith.constant 0 : i32
    %c0_i32_0 = arith.constant 0 : i32
    %c0_i32_1 = arith.constant 0 : i32
    return %arg0, %c0_i32, %c0_i32_0 : i32, i32, i32
  }
  func.func @transform_1(%arg0: i32) -> (i32, i32) {
    %c0_i32 = arith.constant 0 : i32
    %c0_i32_0 = arith.constant 0 : i32
    %c0_i32_1 = arith.constant 0 : i32
    return %c0_i32, %c0_i32_0 : i32, i32
  }
  func.func @transform_2(%arg0: i32) -> (i32, i32) {
    %c0_i32 = arith.constant 0 : i32
    %c0_i32_0 = arith.constant 0 : i32
    %c0_i32_1 = arith.constant 0 : i32
    return %c0_i32, %c0_i32_0 : i32, i32
  }
  func.func @transform_3(%arg0: i32) -> (i32, i32) {
    %c0_i32 = arith.constant 0 : i32
    %c0_i32_0 = arith.constant 0 : i32
    %c0_i32_1 = arith.constant 0 : i32
    return %c0_i32, %c0_i32_0 : i32, i32
  }
  func.func @transform_4(%arg0: i32) -> (i32, i32) {
    %c0_i32 = arith.constant 0 : i32
    %c0_i32_0 = arith.constant 0 : i32
    %c0_i32_1 = arith.constant 0 : i32
    return %c0_i32, %c0_i32_0 : i32, i32
  }
  func.func @transform_5(%arg0: i32) -> (i32, i32) {
    %c0_i32 = arith.constant 0 : i32
    %c0_i32_0 = arith.constant 0 : i32
    %c0_i32_1 = arith.constant 0 : i32
    return %c0_i32, %c0_i32_0 : i32, i32
  }
  func.func @transform_6(%arg0: i32) -> (i32, i32, i32) {
    %c0_i32 = arith.constant 0 : i32
    %c0_i32_0 = arith.constant 0 : i32
    %c0_i32_1 = arith.constant 0 : i32
    return %arg0, %c0_i32, %c0_i32_0 : i32, i32, i32
  }
}

</mosaic_0001>

<bundles_post_ra>
// kernel: dwt_forward.1
= control target key start
LH: loop header
LB: loop body
LE: loop exit
PB: predicated region body
PF: predicated region fallthrough
CT: control target
= control target key end

     0   :  { %s1110_s21 = smov 0   ;;  %s1264_s0 = inlined_call_operand.vmem [shape: f32[2,16,64], index: 0, kind: input, shape index: {}]   ;;  %s1265_s1 = inlined_call_operand.vmem [shape: bf16[80,16], index: 1, kind: input, shape index: {}]   ;;  %s1266_s2 = inlined_call_operand.vmem [shape: bf16[128,64], index: 2, kind: input, shape index: {}]   ;;  %s1267_s3 = inlined_call_operand.vmem [shape: bf16[64,192], index: 3, kind: input, shape index: {}]   ;;  %s1268_s4 = inlined_call_operand.vmem [shape: bf16[64,64], index: 4, kind: input, shape index: {}]   ;;  %s1269_s5 = inlined_call_operand.vmem [shape: f32[3,64], index: 5, kind: input, shape index: {}]   ;;  %s1270_s6 = inlined_call_operand.vmem [shape: f32[2,16,64], index: 6, kind: output, shape index: {}]  }
   0x1 LB: > { %s876_s22 = sadd.s32 4294967295, %s1069_s21   ;;  %p880_p0 = scmp.ge.s32.totalorder %s1069_s21, 1  ;;  %s1069_s21 = sphi %s1110_s21, %s16_s21  }
   0x2   : > { %p212_p1 = scmp.lt.s32.totalorder %s1069_s21, 3 }
   0x4   : > { %p213_p2 = pnand %p880_p0, %p212_p1 }
   0x5   : > { %p242_p3 = scmp.lt.s32.totalorder (!%p213_p2), %s876_s22, 1  ;;  %s1073_s26 = smov (!%p213_p2), 64  }
   0x6   : > { %216 = sbr.rel (%p213_p2) target bundleno = 1327 (0x52f), region = 44 }
   0xb   : > { %v1022_v0 = vld [vmem:[%s1265_s1] sm:$0xff]   ;;  %vm270_vm0 = vcmask 130048   ;;  %s1272_s22 = smov (!%p242_p3, %s876_s22), 1  ;;  %v1023_v4 = vld [vmem:[%s1265_s1 + $0x8] sm:$0xff]   ;;  %v1024_v5 = vld [vmem:[%s1266_s2 + $0x38] sm:$0xff]   ;;  %v1071_v6 = vmov 0.0  }
   0xc   : > { %951 = vmatprep.mubr.msk.bf16.mxu1 %vm270_vm0, %v1022_v0  ;;  %s924_s25 = sshll.u32 %s1272_s22, 4  ;;  %v1025_v7 = vld [vmem:[%s1266_s2 + $0x30] sm:$0xff]   ;;  %v1026_v8 = vld [vmem:[%s1266_s2 + $0x28] sm:$0xff]   ;;  %v1027_v9 = vld [vmem:[%s1266_s2 + $0x20] sm:$0xff]   ;;  %vm1072_vm1 = vmmov 0   ;;  %vm334_vm2 = vcmask 523264  }
   0xd   : > { %s246_s28 = scalar_lea.vmem %s1264_s0, %s924_s25  ;;  %v1028_v10 = vld [vmem:[%s1266_s2 + $0x18] sm:$0xff]   ;;  %v1029_v11 = vld [vmem:[%s1266_s2 + $0x10] sm:$0xff]   ;;  %v1030_v12 = vld [vmem:[%s1266_s2 + $0x8] sm:$0xff]   ;;  %v1074_v33 = vmov 0   ;;  %s251_s20 = scalar_lea.vmem %s1270_s6, %s924_s25 }
   0xe   : > { %v1130_v1 = vld [vmem:[%s246_s28] sm:$0xff]  ;;  %v1132_v2 = vld [vmem:[%s246_s28 + $0x8] sm:$0xff]  ;;  %v1032_v25 = vld [vmem:[%s1267_s3 + $0x34] ss:$8 sps:$4 sm:$0xff]   ;;  %548 = vmatprep.mubr.bf16.mxu0 %v1074_v33 }
   0xf   : > { %v259_v3 = vpack.c.bf16 %v1132_v2, %v1130_v1  ;;  %v1031_v13 = vld [vmem:[%s1266_s2] sm:$0xff]   ;;  %v1034_v26 = vld [vmem:[%s1267_s3 + $0x30] ss:$8 sps:$4 sm:$0xff]   ;;  %524 = vmatprep.subr.bf16.mxu0 %v1032_v25  ;;  %v1038_v29 = vld [vmem:[%s1267_s3 + $0x14] ss:$8 sps:$4 sm:$0xff]  }
  0x10   : > { %525 = vmatpush1.bf16.msra.mxu0 %v1034_v26  ;;  %v1035_v27 = vld [vmem:[%s1267_s3 + $0x24] ss:$8 sps:$4 sm:$0xff]   ;;  %v1037_v28 = vld [vmem:[%s1267_s3 + $0x20] ss:$8 sps:$4 sm:$0xff]   ;;  %v1040_v30 = vld [vmem:[%s1267_s3 + $0x10] ss:$8 sps:$4 sm:$0xff]  }
  0x11   : > { %949 = vmatprep.subr.bf16.mxu1 %v259_v3  ;;  %526 = vmatprep.subr.bf16.mxu0 %v1035_v27  ;;  %v1041_v31 = vld [vmem:[%s1267_s3 + $0x4] ss:$8 sps:$4 sm:$0xff]   ;;  %v1043_v32 = vld [vmem:[%s1267_s3] ss:$8 sps:$4 sm:$0xff]   ;;  %v1044_v62 = vld [vmem:[%s1265_s1 + $0x18] sm:$0xff]  }
  0x12   : > { %950 = vmatpush3.bf16.msra.mxu1 %v259_v3  ;;  %v889_v34 = vld [vmem:[%s1269_s5] ss:$0 sm:$0xff]  ;;  %v1045_v63 = vld [vmem:[%s1265_s1 + $0x10] sm:$0xff]  }
  0x13   : > { %955 = vmatprep.subr.bf16.mxu1 %v1071_v6  ;;  %v1046_v60 = vld [vmem:[%s1265_s1 + $0x20] sm:$0xff]  }
  0x14   : > { %527 = vmatpush1.bf16.msra.mxu0 %v1037_v28 }
  0x15   : > { %952 = vmatmul.mubr.msk.bf16.vlgmr.msra.gmra.mxu1 %vm270_vm0, %v1023_v4  ;;  %528 = vmatprep.subr.bf16.mxu0 %v1038_v29  ;;  %v1047_v4 = vld [vmem:[%s1268_s4 + $0x18] sm:$0xff]  }
  0x16   : > { %956 = vmatpush3.bf16.msra.mxu1 %v1024_v5  ;;  %971 = vmatprep.mubr.msk.bf16.mxu1 %vm1072_vm1, %v1071_v6  ;;  %v1048_v5 = vld [vmem:[%s1268_s4 + $0x10] sm:$0xff]  }
  0x17   : > { %957 = vmatprep.subr.bf16.mxu1 %v1071_v6 }
  0x18   : > { %529 = vmatpush1.bf16.msra.mxu0 %v1040_v30 }
  0x19   : > { %530 = vmatprep.subr.bf16.mxu0 %v1041_v31 }
  0x1a   : > { %958 = vmatpush3.bf16.msra.mxu1 %v1025_v7  ;;  %v1049_v7 = vld [vmem:[%s1268_s4 + $0x8] sm:$0xff]  }
  0x1b   : > { %959 = vmatprep.subr.bf16.mxu1 %v1071_v6 }
  0x1c   : > { %531 = vmatpush1.bf16.msra.mxu0 %v1043_v32 }
  0x1d   : > { %975 = vmatprep.subr.bf16.mxu0 %v1071_v6 }
  0x1e   : > { %960 = vmatpush3.bf16.msra.mxu1 %v1026_v8  ;;  %v1050_v8 = vld [vmem:[%s1268_s4] sm:$0xff]  }
  0x1f   : > { %961 = vmatprep.subr.bf16.mxu1 %v1071_v6 }
  0x22   : > { %962 = vmatpush3.bf16.msra.mxu1 %v1027_v9 }
  0x23   : > { %963 = vmatprep.subr.bf16.mxu1 %v1071_v6 }
  0x26   : > { %964 = vmatpush3.bf16.msra.mxu1 %v1028_v10 }
  0x27   : > { %965 = vmatprep.subr.bf16.mxu1 %v1071_v6 }
  0x2a   : > { %966 = vmatpush3.bf16.msra.mxu1 %v1029_v11 }
  0x2b   : > { %967 = vmatprep.subr.bf16.mxu1 %v1071_v6 }
  0x2e   : > { %968 = vmatpush3.bf16.msra.mxu1 %v1030_v12 }
  0x2f   : > { %969 = vmatprep.subr.bf16.mxu1 %v1071_v6 }
  0x32   : > { %970 = vmatpush3.bf16.msra.mxu1 %v1031_v13 }
  0x33   : > { %987 = vmatprep.subr.bf16.mxu1 %v1071_v6 }
  0xd5   : > { %v953_v14 = vpop.f32.mrf.mxu1 }
  0xd7   : > { %v311_v15 = vpop.f32.mrf.mxu1 }
  0xd9   : > { %v954_v16 = vpop.f32.mrf.mxu1 }
  0xda   : > { %v1017_v17 = vpack.i.bf16 %v954_v16, %v953_v14 }
  0xdb   : > { %v314_v21 = vpop.f32.mrf.mxu1 }
  0xdc   : > { %1018 = vrot.lane.b32.xlu0 %v1017_v17, %s1073_s26 }
 0x14e   : > { %v1019_v18 = vpop.permute.xlu0 %1018 }
 0x14f   : > { %v1021_v19 = vunpack.i.h.bf16 %v1019_v18  ;;  %v1020_v20 = vunpack.i.l.bf16 %v1019_v18 }
 0x151   : > { %v335_v22 = vsel %vm334_vm2, %v311_v15, %v1020_v20  ;;  %v336_v23 = vsel %vm334_vm2, %v314_v21, %v1021_v19  ;;  %v915_v15 = vld [vmem:[%s1269_s5 + $0x1] ss:$0 sm:$0xff] }
 0x152   : > { %v353_v24 = vpack.c.bf16 %v336_v23, %v335_v22 }
 0x154   : > { %972 = vmatmul.mubr.bf16.vlgmr.msra.gmra.mxu1 %v353_v24 }
 0x155   : > { %989 = vmatprep.mubr.msk.bf16.mxu1 %vm1072_vm1, %v1071_v6 }
 0x214   : > { %v441_v35 = vpop.f32.mrf.mxu1 }
 0x215   : > { %v442_v36 = vadd.f32 %v889_v34, %v441_v35 }
 0x216   : > { %v973_v37 = vpop.f32.mrf.mxu1 }
 0x217   : > { %v898_v38 = vmul.f32 -1.442695, %v442_v36 }
 0x218   : > { %v444_v39 = vpop.f32.mrf.mxu1 }
 0x219   : > { %1051 = vpow2.f32 %v898_v38  ;;  %v445_v40 = vadd.f32 %v889_v34, %v444_v39  ;;  %v916_v34 = vld [vmem:[%s1269_s5 + $0x2] ss:$0 sm:$0xff] }
 0x21a   : > { %v974_v41 = vpop.f32.mrf.mxu1 }
 0x21b   : > { %v899_v42 = vmul.f32 -1.442695, %v445_v40 }
 0x21d   : > { %1053 = vpow2.f32 %v899_v42 }
 0x226   : > { %v1052_v43 = vpop.eup %1051 }
 0x227   : > { %v454_v44 = vadd.f32 1.0, %v1052_v43 }
 0x229   : > { %1055 = vrcp.f32 %v454_v44 }
 0x22a   : > { %v1054_v45 = vpop.eup %1053 }
 0x22b   : > { %v455_v46 = vadd.f32 1.0, %v1054_v45 }
 0x22d   : > { %1057 = vrcp.f32 %v455_v46 }
 0x236   : > { %v1056_v47 = vpop.eup %1055 }
 0x237   : > { %v460_v48 = vadd.f32 0.5, %v1056_v47 }
 0x239   : > { %v462_v51 = vmul.f32 %v460_v48, %v1130_v1 }
 0x23a   : > { %v1058_v49 = vpop.eup %1057 }
 0x23b   : > { %v461_v50 = vadd.f32 0.5, %v1058_v49 }
 0x23d   : > { %v463_v52 = vmul.f32 %v461_v50, %v1132_v2 }
 0x23f   : > { %v472_v53 = vpack.c.bf16 %v463_v52, %v462_v51 }
 0x241   : > { %908 = vmatmul.mubr.msk.bf16.vlgmr.msra.gmra.mxu0 %vm334_vm2, %v472_v53 }
 0x242   : > { %977 = vmatprep.mubr.msk.bf16.mxu0 %vm1072_vm1, %v1071_v6 }
 0x301   : > { %v550_v54 = vpop.f32.mrf.mxu0 }
 0x303   : > { %v552_v55 = vpop.f32.mrf.mxu0 }
 0x305   : > { %v554_v56 = vpop.f32.mrf.mxu0 }
 0x306   : > { %v561_v57 = vpack.c.bf16 %v554_v56, %v550_v54 }
 0x307   : > { %v556_v58 = vpop.f32.mrf.mxu0 }
 0x308   : > { %v668_v59 = vpack.c.bf16 %v556_v58, %v552_v55  ;;  %570 = vrot.lane.b32.xlu0 %v561_v57, %s1073_s26 }
 0x30a   : > { %988 = vmatpush3.bf16.msra.mxu1 %v668_v59 }
 0x30d   : > { %990 = vmatmul.mubr.msk.bf16.vlgmr.msra.gmra.mxu1 %vm270_vm0, %v1046_v60 }
 0x37a   : > { %v571_v61 = vpop.permute.xlu0 %570 }
 0x37b   : > { %976 = vmatpush3.bf16.msra.mxu0 %v571_v61 }
 0x37c   : > { %981 = vmatprep.subr.bf16.mxu0 %v1071_v6 }
 0x37e   : > { %978 = vmatmul.mubr.msk.bf16.vlgmr.msra.gmra.mxu0 %vm270_vm0, %v1044_v62 }
 0x37f   : > { %982 = vmatpush3.bf16.msra.mxu0 %v561_v57  ;;  %983 = vmatprep.mubr.msk.bf16.mxu0 %vm1072_vm1, %v1071_v6 }
 0x380   : > { %993 = vmatprep.subr.bf16.mxu0 %v1071_v6 }
 0x386   : > { %984 = vmatmul.mubr.msk.bf16.vlgmr.msra.gmra.mxu0 %vm270_vm0, %v1045_v63 }
 0x387   : > { %1001 = vmatprep.mubr.msk.bf16.mxu0 %vm1072_vm1, %v1071_v6  ;;  %994 = vmatpush3.bf16.msra.mxu0 %v1047_v4 }
 0x388   : > { %995 = vmatprep.subr.bf16.mxu0 %v1071_v6 }
 0x38b   : > { %996 = vmatpush3.bf16.msra.mxu0 %v1048_v5 }
 0x38c   : > { %997 = vmatprep.subr.bf16.mxu0 %v1071_v6 }
 0x38f   : > { %998 = vmatpush3.bf16.msra.mxu0 %v1049_v7 }
 0x390   : > { %999 = vmatprep.subr.bf16.mxu0 %v1071_v6 }
 0x393   : > { %1000 = vmatpush3.bf16.msra.mxu0 %v1050_v8 }
 0x3cd   : > { %v711_v0 = vpop.f32.mrf.mxu1 }
 0x3cf   : > { %v991_v1 = vpop.f32.mrf.mxu1 }
 0x3d1   : > { %v714_v2 = vpop.f32.mrf.mxu1 }
 0x3d3   : > { %v992_v3 = vpop.f32.mrf.mxu1 }
 0x43e   : > { %v610_v9 = vpop.f32.mrf.mxu0 }
 0x440   : > { %v979_v10 = vpop.f32.mrf.mxu0 }
 0x442   : > { %v613_v11 = vpop.f32.mrf.mxu0 }
 0x444   : > { %v980_v12 = vpop.f32.mrf.mxu0 }
 0x446   : > { %v659_v13 = vpop.f32.mrf.mxu0 }
 0x447   : > { %v660_v14 = vadd.f32 %v659_v13, %v610_v9 }
 0x448   : > { %v985_v16 = vpop.f32.mrf.mxu0 }
 0x449   : > { %v718_v17 = vadd.f32 %v711_v0, %v660_v14 }
 0x44a   : > { %v662_v18 = vpop.f32.mrf.mxu0 }
 0x44b   : > { %v725_v19 = vadd.f32 %v915_v15, %v718_v17  ;;  %v663_v6 = vadd.f32 %v662_v18, %v613_v11 }
 0x44c   : > { %v986_v20 = vpop.f32.mrf.mxu0 }
 0x44d   : > { %v729_v21 = vmul.f32 0.70710677, %v725_v19  ;;  %v719_v22 = vadd.f32 %v714_v2, %v663_v6  ;;  %v727_v28 = vmul.f32 0.5, %v725_v19 }
 0x44f   : > { %1059 = verf.f32 %v729_v21  ;;  %v726_v23 = vadd.f32 %v915_v15, %v719_v22 }
 0x451   : > { %v730_v24 = vmul.f32 0.70710677, %v726_v23  ;;  %v728_v29 = vmul.f32 0.5, %v726_v23 }
 0x453   : > { %1061 = verf.f32 %v730_v24 }
 0x45c   : > { %v1060_v25 = vpop.eup %1059 }
 0x45d   : > { %v733_v26 = vadd.f32 1.0, %v1060_v25 }
 0x45f   : > { %v735_v31 = vmul.f32 %v733_v26, %v727_v28 }
 0x460   : > { %v1062_v27 = vpop.eup %1061 }
 0x461   : > { %v734_v30 = vadd.f32 1.0, %v1062_v27 }
 0x463   : > { %v736_v32 = vmul.f32 %v734_v30, %v728_v29 }
 0x465   : > { %v745_v33 = vpack.c.bf16 %v736_v32, %v735_v31 }
 0x467   : > { %1002 = vmatmul.mubr.msk.bf16.vlgmr.msra.gmra.mxu0 %vm334_vm2, %v745_v33 }
 0x527   : > { %v812_v35 = vpop.f32.mrf.mxu0 }
 0x528   : > { %v813_v36 = vadd.f32 %v916_v34, %v812_v35 }
 0x529   : > { %v1003_v37 = vpop.f32.mrf.mxu0 }
 0x52a   : > { %819 = vst.msk [vmem:[%s251_s20] sm:$0xff] %vm334_vm2, %v813_v36 }
 0x52b   : > { %v815_v38 = vpop.f32.mrf.mxu0 }
 0x52c   : > { %v816_v39 = vadd.f32 %v916_v34, %v815_v38 }
 0x52d   : > { %v1004_v40 = vpop.f32.mrf.mxu0 }
 0x52e   : > { %820 = vst.msk [vmem:[%s251_s20 + $0x8] sm:$0xff] %vm334_vm2, %v816_v39 }
 0x52f PF: > { %s16_s21 = sadd.s32 1, %s1069_s21  }
 0x530   : > { %p13_p4 = scmp.ge.s32.totalorder %s16_s21, 4  }
 0x532   :  { %15 = sbr.rel (!%p13_p4) target bundleno = 1 (0x1), region = 74 }

</bundles_post_ra>
